<compile_context>
chip_gen: v7x
topology: tpu7x:2x2x1
jax: 0.10.0
libtpu: 0.0.40
codegen_flags: <defaults>
</compile_context>

<pallas_src>
import functools
import math

import jax
import jax.numpy as jnp
from jax import lax
from jax.experimental import pallas as pl
from jax.experimental.pallas import tpu as pltpu


_LANE = 128
_BLOCK_BYTES = 4 * 1024 * 1024     # per-input-block budget (multi-buffered)
_ACC_MAX_LANES = 2048              # lane-tile cap on the channel-tiled path
_VMEM_LIMIT = 32 * 1024 * 1024     # explicit scoped-VMEM limit, safe on v5e/v6e/v7x


def _round_up(x, m):
    return (x + m - 1) // m * m


def _neutral_min(dtype):
    if jnp.issubdtype(dtype, jnp.floating):
        return float("-inf")
    if jnp.issubdtype(dtype, jnp.integer):
        return int(jnp.iinfo(dtype).min)
    return 0  # bool


def _in_spec(block_shape, index_map, *, buffers=2):
    """BlockSpec with optional deeper pipelining; degrades gracefully if the
    installed jax does not expose pl.Buffered / pipeline_mode."""
    if buffers > 2 and hasattr(pl, "Buffered"):
        try:
            return pl.BlockSpec(block_shape, index_map,
                                pipeline_mode=pl.Buffered(buffer_count=buffers))
        except TypeError:
            pass
    return pl.BlockSpec(block_shape, index_map)


def _max_c_single_kernel(x_ref, o_ref):
    # x_ref: (TB, C, TS) -> o_ref: (TB, 1, TS); whole channel extent in-block.
    o_ref[...] = jnp.max(x_ref[...], axis=1, keepdims=True)


def _max_c_accum_kernel(x_ref, o_ref, *, tail_valid, fill):
    # x_ref: (1, TC, TS); o_ref: (1, 1, TS) stays resident across the k axis.
    x = x_ref[...]
    if tail_valid is not None:
        # Last channel chunk extends past C: neutralize out-of-range rows
        # in-kernel (hidden under DMA) instead of padding the input in HBM.
        is_last = pl.program_id(2) == pl.num_programs(2) - 1
        rows = lax.broadcasted_iota(jnp.int32, x.shape, 1)
        keep = jnp.logical_or(jnp.logical_not(is_last), rows < tail_valid)
        x = jnp.where(keep, x, jnp.asarray(fill, dtype=x.dtype))
    chunk = jnp.max(x, axis=1, keepdims=True)

    @pl.when(pl.program_id(2) == 0)
    def _init():
        o_ref[...] = chunk                       # init with real data, not zeros

    @pl.when(pl.program_id(2) > 0)
    def _accum():
        o_ref[...] = jnp.maximum(o_ref[...], chunk)


def max_dim1(x, *, block_bytes=_BLOCK_BYTES):
    """Pallas TPU implementation of torch.max(x, dim=1)[0]."""
    assert x.ndim >= 2, "max over dim=1 needs at least 2 dims"
    B, C = int(x.shape[0]), int(x.shape[1])
    tail_dims = tuple(int(d) for d in x.shape[2:])
    S = int(math.prod(tail_dims)) if tail_dims else 1
    dtype = x.dtype
    itemsize = jnp.dtype(dtype).itemsize
    sub = max(8, 32 // itemsize)                 # sublane granularity (f32:8, bf16:16)

    xs = x.reshape(B, C, S)                      # free: contiguous metadata reshape

    # ---- lane-axis handling: never pad S on the host unless unavoidable -----
    lane_aligned = (S % _LANE == 0)
    # Pathological fallback only: S not lane-aligned AND too large for a single
    # full-extent lane tile -> pad once.  All common cases run pad-free.
    pad_s = (not lane_aligned) and (S * itemsize * sub > block_bytes)
    S_eff = _round_up(S, _LANE) if pad_s else S
    if pad_s:
        xs = jnp.pad(xs, ((0, 0), (0, 0), (0, S_eff - S)))
        lane_aligned = True

    cost = pl.CostEstimate(
        flops=B * C * S_eff,
        transcendentals=0,
        bytes_accessed=(B * C * S_eff + B * S_eff) * itemsize,
    )

    # Minimal lane tile used only to decide whether the full channel extent fits.
    ts_probe = min(S_eff, 4 * _LANE) if lane_aligned else S_eff
    c_fits = C * ts_probe * itemsize <= block_bytes

    if c_fits:
        # ------ single pass: whole C in-block; fold batch into the block -----
        if lane_aligned:
            lane_budget = max(ts_probe,
                              (block_bytes // (C * itemsize)) // _LANE * _LANE)
            TS = min(S_eff, lane_budget)
        else:
            TS = S_eff                            # full-extent exception, no pad
        num_s = pl.cdiv(S_eff, TS)

        row_bytes = C * TS * itemsize
        TB = max(1, min(B, block_bytes // row_bytes))
        num_b = pl.cdiv(B, TB)
        # Keep >= 2 parallel grid steps when the data allows it so both v7x
        # TensorCores stream from HBM (harmless on single-TC v5e/v6e).
        if num_b * num_s < 2:
            if B > 1:
                TB = (B + 1) // 2
                num_b = pl.cdiv(B, TB)
            elif lane_aligned and S_eff > _LANE:
                TS = max(_LANE, pl.cdiv(S_eff // _LANE, 2) * _LANE)
                num_s = pl.cdiv(S_eff, TS)

        out = pl.pallas_call(
            _max_c_single_kernel,
            out_shape=jax.ShapeDtypeStruct((B, 1, S_eff), dtype),
            grid_spec=pltpu.PrefetchScalarGridSpec(
                num_scalar_prefetch=0,
                grid=(num_b, num_s),
                in_specs=[pl.BlockSpec((TB, C, TS), lambda b, s: (b, 0, s))],
                out_specs=pl.BlockSpec((TB, 1, TS), lambda b, s: (b, 0, s)),
            ),
            compiler_params=pltpu.CompilerParams(
                dimension_semantics=("parallel", "parallel"),
                vmem_limit_bytes=_VMEM_LIMIT,
            ),
            cost_estimate=cost,
        )(xs)
    else:
        # ------ channel-tiled reduction with resident running max ------------
        TS = min(S_eff, _ACC_MAX_LANES) if lane_aligned else S_eff   # wide lanes
        num_s = pl.cdiv(S_eff, TS)

        TC = max(sub, (block_bytes // (TS * itemsize)) // sub * sub)
        TC = min(TC, _round_up(C, sub))
        num_k = pl.cdiv(C, TC)
        rem = C - (num_k - 1) * TC
        tail_valid = None if rem == TC else rem   # mask only when C % TC != 0

        kernel = functools.partial(_max_c_accum_kernel,
                                   tail_valid=tail_valid,
                                   fill=_neutral_min(dtype))

        out = pl.pallas_call(
            kernel,
            out_shape=jax.ShapeDtypeStruct((B, 1, S_eff), dtype),
            grid_spec=pltpu.PrefetchScalarGridSpec(
                num_scalar_prefetch=0,
                grid=(B, num_s, num_k),                        # reduction axis last
                in_specs=[_in_spec((1, TC, TS),
                                   lambda b, s, k: (b, k, s), buffers=3)],
                out_specs=pl.BlockSpec((1, 1, TS), lambda b, s, k: (b, 0, s)),
            ),
            compiler_params=pltpu.CompilerParams(
                dimension_semantics=("parallel", "parallel", "arbitrary"),
                vmem_limit_bytes=_VMEM_LIMIT,
            ),
            cost_estimate=cost,
        )(xs)

    out = out.reshape(B, S_eff)
    if pad_s:
        out = out[:, :S]                          # only in the rare fallback path
    return out.reshape((B,) + tail_dims)


if __name__ == "__main__":
    key = jax.random.PRNGKey(0)

    # Main test shape (matches the module's expected input).
    x = jax.random.normal(key, (2, 4, 16, 16), dtype=jnp.float32)
    out = jax.block_until_ready(max_dim1(x))
    ref = jnp.max(x, axis=1)
    assert out.shape == (2, 16, 16)
    assert out.dtype == x.dtype
    assert jnp.allclose(out, ref), "mismatch vs reference max over dim 1"

    k1, k2, k3, k4 = jax.random.split(key, 4)

    # Batch-folded single-pass path (TB > 1, >=2 grid steps kept).
    xb = jax.random.normal(k1, (8, 4, 16, 16), dtype=jnp.float32)
    assert jnp.allclose(jax.block_until_ready(max_dim1(xb)), jnp.max(xb, axis=1))

    # Non-lane-aligned spatial extent: full-extent (pad-free) lane tile.
    xn = jax.random.normal(k2, (2, 4, 5, 10), dtype=jnp.float32)
    assert jnp.allclose(jax.block_until_ready(max_dim1(xn)), jnp.max(xn, axis=1))

    # Channel-tiled accumulator path (tiny block budget forces it).
    x2 = jax.random.normal(k3, (2, 64, 8, 32), dtype=jnp.float32)
    out2 = jax.block_until_ready(max_dim1(x2, block_bytes=4096))
    assert jnp.allclose(out2, jnp.max(x2, axis=1)), "accum path mismatch"

    # Accumulator path with C not a multiple of the channel tile (in-kernel
    # tail mask, no host pad), on mostly negative data.
    x3 = jax.random.normal(k4, (2, 20, 8, 32), dtype=jnp.float32) - 5.0
    out3 = jax.block_until_ready(max_dim1(x3, block_bytes=4096))
    assert jnp.allclose(out3, jnp.max(x3, axis=1)), "accum path (ragged C) mismatch"

    print("KERNEL_OK")
</pallas_src>

<mosaic_0001>
module attributes {stable_mosaic.version = 11 : i64} {
  func.func @_max_c_single_kernel(%arg0: i32, %arg1: i32, %arg2: memref<1x4x256xf32, #tpu.memory_space<vmem>>, %arg3: memref<1x1x256xf32, #tpu.memory_space<vmem>>) attributes {dimension_semantics = [#tpu.dimension_semantics<parallel>, #tpu.dimension_semantics<parallel>], iteration_bounds = array<i64: 2, 1>, scalar_prefetch = 0 : i64, scratch_operands = 0 : i64, tpu.core_type = #tpu.core_type<tc>, window_params = [{transform_indices = @transform_0, window_bounds = array<i64: 1, 4, 256>}, {transform_indices = @transform_1, window_bounds = array<i64: 1, 1, 256>}]} {
    %c0 = arith.constant 0 : index
    %c0_0 = arith.constant 0 : index
    %c0_1 = arith.constant 0 : index
    %0 = vector.load %arg2[%c0, %c0_0, %c0_1] : memref<1x4x256xf32, #tpu.memory_space<vmem>>, vector<1x4x256xf32>
    %cst = arith.constant dense<0xFF800000> : vector<1x256xf32>
    %1 = vector.multi_reduction <maximumf>, %0, %cst [1] : vector<1x4x256xf32> to vector<1x256xf32>
    %2 = vector.shape_cast %1 : vector<1x256xf32> to vector<1x1x256xf32>
    %c0_2 = arith.constant 0 : index
    %c0_3 = arith.constant 0 : index
    %c0_4 = arith.constant 0 : index
    %3 = vector.load %arg3[%c0_2, %c0_3, %c0_4] : memref<1x1x256xf32, #tpu.memory_space<vmem>>, vector<1x1x256xf32>
    tpu.vector_store %arg3[%c0_2, %c0_3, %c0_4], %2 {strides = array<i32>} : memref<1x1x256xf32, #tpu.memory_space<vmem>>, vector<1x1x256xf32>,
    return
  }
  func.func @transform_0(%arg0: i32, %arg1: i32) -> (i32, i32, i32) {
    %c0_i32 = arith.constant 0 : i32
    %c0_i32_0 = arith.constant 0 : i32
    return %arg0, %c0_i32, %arg1 : i32, i32, i32
  }
  func.func @transform_1(%arg0: i32, %arg1: i32) -> (i32, i32, i32) {
    %c0_i32 = arith.constant 0 : i32
    %c0_i32_0 = arith.constant 0 : i32
    return %arg0, %c0_i32, %arg1 : i32, i32, i32
  }
}

</mosaic_0001>

<bundles_post_ra>
// kernel: tpu_custom_call.1
= control target key start
LH: loop header
LB: loop body
LE: loop exit
PB: predicated region body
PF: predicated region fallthrough
CT: control target
= control target key end

     0   :  { %6 = vsyncpa [#allocation3], 0  ;;  %s677_s0 = inlined_call_operand.hbm [shape: f32[2,4,256], index: 0, kind: input, shape index: {}]   ;;  %s678_s1 = inlined_call_operand.hbm [shape: f32[2,1,256], index: 1, kind: output, shape index: {}]  }
   0x1   :  { %8 = vsyncpa [#allocation3 + $0x1], 0 }
   0x2   :  { %9 = vsyncpa [#allocation4], 0 }
   0x3   :  { %11 = vsyncpa [#allocation4 + $0x1], 0  ;;  %s504_s6 = smov 0   ;;  %s506_s7 = smov 0  }
   0x4   :  { %s508_s8 = smov 0   ;;  %s510_s9 = smov 0  }
   0x5   :  { %s512_s10 = smov 0   ;;  %s514_s11 = smov 0  }
   0x6 LB: > { %s296_s12 = sadd.s32 4294967295, %s489_s11   ;;  %s297_s13 = sadd.s32 4294967294, %s489_s11   ;;  %s489_s11 = sphi %s514_s11, %s17_s11   ;;  %s485_s10 = sphi %s512_s10, %s694_s10   ;;  %s481_s9 = sphi %s510_s9, %s693_s9   ;;  %s477_s8 = sphi %s508_s8, %s692_s8   ;;  %s473_s7 = sphi %s506_s7, %s691_s7   ;;  %s469_s6 = sphi %s504_s6, %s690_s6  }
   0x7   : > { %s29_s14 = sadd.s32 1, %s485_s10  ;;  %s38_s15 = sadd.s32 1, %s477_s8 }
   0x8   : > { %p31_p0 = scmp.ge.s32.totalorder %s29_s14, 2  ;;  %p45_p1 = scmp.ne.s32.totalorder %s477_s8, %s473_s7 }
   0x9   : > { %p46_p2 = scmp.eq.s32.totalorder %s489_s11, 0  ;;  %p51_p3 = scmp.ne.s32.totalorder %s473_s7, %s469_s6 }
   0xa   : > { %s696_s14 = smov (%p31_p0, %s29_s14), 0  ;;  %p52_p5 = scmp.eq.s32.totalorder %s296_s12, 0 }
   0xb   : > { %p545_p4 = por %p46_p2, %p45_p1  ;;  %s33_s17 = ssub.s32 %s485_s10, %s696_s14 }
   0xc   : > { %p77_p6 = scmp.eq.s32.totalorder %s296_s12, 1  ;;  %p36_p7 = scmp.eq.s32.totalorder %s33_s17, 0 }
   0xd   : > { %p551_p8 = por %p52_p5, %p51_p3  ;;  %p83_p10 = scmp.eq.s32.totalorder %s297_s13, 1 }
   0xe   : > { %p555_p9 = por %p77_p6, %p45_p1  ;;  %p325_p13 = scmp.lt.s32.totalorder %s489_s11, 2 }
   0xf   : > { %s560_s20 = scalar_select %p36_p7, %s477_s8, %s38_s15  }
  0x10   : > { %s682_s19 = scalar_select %p555_p9, 1, 0 }
  0x11   : > { %p562_p11 = por %p83_p10, %p51_p3  ;;  %s103_s22 = sand.u32 1, %s477_s8  }
  0x12   : > { %s300_s23 = sshll.u32 %s103_s22, 3  ;;  %s311_s24 = sshll.u32 %s485_s10, 7 }
  0x13   : > { %s683_s21 = scalar_select %p562_p11, 1, 0 }
  0x14   : > { %s573_s27 = scalar_lea.hbm %s677_s0, %s311_s24  ;;  %s107_s28 = scalar_lea.vmem [#allocation2], %s300_s23 }
  0x15   : > { %s117_s29 = sshll.u32 %s107_s28, 4  ;;  %p579_p0 = pnand %p325_p13, %p545_p4  ;;  %s575_s29 = int_to_ptr.vmem [resolvable:$true] %s117_s29 }
  0x16   : > { %s104_s2 = scalar_lea.sflag [#allocation3], %s103_s22  ;;  %s377_s3 = scalar_lea.hbm %s573_s27, 128 }
  0x17   : > { %p378_p3 = scmp.ne.s32.totalorder %s573_s27, %s377_s3  ;;  %p379_p5 = pneg %p579_p0 }
  0x18   : > { %s382_s12 = scalar_lea.hbm %s677_s0, 256  ;;  %p383_p4 = scmp.lt.u32.totalorder %s573_s27, %s677_s0 }
  0x19   : > { %p380_p6 = pnand %p379_p5, %p378_p3  ;;  %p384_p10 = scmp.lt.u32.totalorder %s382_s12, %s377_s3 }
  0x1a   : > { %p386_p12 = scmp.lt.u32.totalorder %s377_s3, %s573_s27 }
  0x1b   : > { %p381_p7 = pneg %p380_p6  ;;  %p385_p13 = por %p384_p10, %p383_p4 }
  0x1d   : > { %p387_p1 = por %p386_p12, %p385_p13 }
  0x1f   : > { %p388_p2 = pnand %p387_p1, %p381_p7 }
  0x21   : > { %391 = shalt.err (!%p388_p2)
}
  0x22   : > { %s392_s16 = scalar_lea.vmem %s575_s29, 128  ;;  %s491_s17 = smov [#allocation2]  }
  0x23   : > { %p393_p3 = scmp.ne.s32.totalorder %s575_s29, %s392_s16  ;;  %s397_s22 = sshll.u32 %s491_s17, 4  ;;  %s398_s22 = int_to_ptr.vmem [resolvable:$false] %s397_s22 }
  0x24   : > { %s399_s23 = scalar_lea.vmem %s398_s22, 256  ;;  %p400_p9 = scmp.lt.s32.totalorder %s575_s29, %s398_s22 }
  0x25   : > { %p395_p6 = pnand %p393_p3, %p379_p5  ;;  %p401_p4 = scmp.lt.s32.totalorder %s399_s23, %s392_s16 }
  0x27   : > { %p396_p11 = pneg %p395_p6  ;;  %p402_p10 = por %p401_p4, %p400_p9 }
  0x29   : > { %p403_p12 = pnand %p402_p10, %p396_p11 }
  0x2b   : > { %406 = shalt.err (!%p403_p12)
}
  0x2c   : > { %320 = dma.hbm_to_vmem [thread:$0]  (!%p579_p0), %s573_s27, 128, %s575_s29, %s104_s2  }
  0x2d   : > { %p685_p1 = scmp.lt.s32.totalorder %s489_s11, 3  ;;  %p686_p2 = scmp.ge.s32.totalorder %s489_s11, 1 }
  0x2f   : > { %p123_p5 = pnand %p686_p2, %p685_p1 }
  0x30   : > { %s615_s24 = sand.u32 (!%p123_p5), 1, %s473_s7  }
  0x31   : > { %126 = sbr.rel (%p123_p5) target bundleno = 93 (0x5d), region = 24  ;;  %s304_s25 = sshll.u32 (!%p123_p5), %s615_s24, 3 }
  0x32   : > { %s129_s26 = scalar_lea.sflag (!%p123_p5), [#allocation3], %s615_s24  ;;  %s132_s28 = scalar_lea.vmem (!%p123_p5), [#allocation2], %s304_s25 }
  0x38   : > { %460 = dma.done.wait (%p551_p8), %s129_s26, 128  }
  0x39   : > { %462 = vsyncadd (%p551_p8), %s129_s26, 4294967168  ;;  %vm157_vm0 = vcmask 1043456   ;;  %v153_v0 = vld [vmem:[%s132_s28] sm:$0xff]  ;;  %v492_v9 = vmov 1966171168   ;;  %v178_v11 = vlaneseq  ;;  %s305_s18 = sshll.u32 %s615_s24, 1 }
  0x3a   : > { %v155_v1 = vcombine.high %v153_v0, %v153_v0  ;;  %v158_v2 = vsel %vm157_vm0, %v153_v0, -inf  ;;  %v176_v10 = vunpack.c.l.s4 %v492_v9  ;;  %s150_s27 = scalar_lea.vmem [#allocation5], %s305_s18  ;;  %s312_s30 = sshll.u32 %s481_s9, 5 }
  0x3b   : > { %v159_v3 = vrot.slane %v158_v2, 4  ;;  %v179_v17 = vshrl.u32 %v178_v11, 7  ;;  %s212_s29 = sshll.u32 %s150_s27, 4  ;;  %vm192_vm1 = vcmp.lt.s32.totalorder %v178_v11, 256  ;;  %s630_s4 = scalar_lea.hbm %s678_s1, %s312_s30  ;;  %s625_s29 = int_to_ptr.vmem [resolvable:$true] %s212_s29 }
  0x3c   : > { %v165_v4 = vsel %vm157_vm0, %v155_v1, -inf  ;;  %v177_v16 = vunpack.c.0.s8 %v176_v10  ;;  %s196_s5 = scalar_lea.sflag [#allocation4], %s615_s24  ;;  %s407_s12 = scalar_lea.vmem %s625_s29, 32 }
  0x3d   : > { %v160_v5 = vmax.f32 %v158_v2, %v159_v3  ;;  %v166_v6 = vrot.slane %v165_v4, 4  ;;  %p408_p8 = scmp.ne.s32.totalorder %s625_s29, %s407_s12  ;;  %p687_p9 = scmp.ne.s32.totalorder %s682_s19, 0 }
  0x3e   : > { %v180_v21 = vsub.s32 %v177_v16, %v179_v17  ;;  %s493_s9 = smov [#allocation5]  }
  0x3f   : > { %v161_v7 = vrot.slane %v160_v5, 2  ;;  %v167_v8 = vmax.f32 %v165_v4, %v166_v6  ;;  %p409_p11 = pnand %p408_p8, %p687_p9  ;;  %s411_s13 = sshll.u32 %s493_s9, 4  ;;  %s412_s13 = int_to_ptr.vmem [resolvable:$false] %s411_s13 }
  0x40   : > { %s413_s15 = scalar_lea.vmem %s412_s13, 64  ;;  %p414_p7 = scmp.lt.s32.totalorder %s625_s29, %s412_s13 }
  0x41   : > { %v162_v12 = vmax.f32 %v160_v5, %v161_v7  ;;  %v168_v13 = vrot.slane %v167_v8, 2  ;;  %p410_p0 = pneg %p409_p11  ;;  %p415_p13 = scmp.lt.s32.totalorder %s413_s15, %s407_s12 }
  0x43   : > { %v163_v14 = vrot.slane %v162_v12, 1  ;;  %v169_v15 = vmax.f32 %v167_v8, %v168_v13  ;;  %p416_p3 = por %p415_p13, %p414_p7 }
  0x45   : > { %v164_v18 = vmax.f32 %v162_v12, %v163_v14  ;;  %v170_v19 = vrot.slane %v169_v15, 1  ;;  %p417_p6 = pnand %p416_p3, %p410_p0 }
  0x47   : > { %v171_v20 = vmax.f32 %v169_v15, %v170_v19 }
  0x49   : > { %v174_v22 = vcombine.low %v164_v18, %v171_v20 }
  0x4b   : > { %v181_v23 = vrot.slane %v174_v22, %v180_v21 }
  0x4d   : > { %v188_v24 = vrot.slane %v181_v23, %v180_v21 }
  0x4f   : > { %194 = vst.msk [vmem:[%s150_s27] sm:$0x3] %vm192_vm1, %v188_v24 }
  0x50   : > { %420 = shalt.err (!%p417_p6)
}
  0x51   : > { %s421_s16 = scalar_lea.hbm %s630_s4, 32  ;;  %s425_s23 = scalar_lea.hbm %s678_s1, 64 }
  0x52   : > { %p422_p4 = scmp.ne.s32.totalorder %s630_s4, %s421_s16  ;;  %p426_p1 = scmp.lt.u32.totalorder %s630_s4, %s678_s1 }
  0x53   : > { %p427_p2 = scmp.lt.u32.totalorder %s425_s23, %s421_s16  ;;  %p429_p8 = scmp.lt.u32.totalorder %s421_s16, %s630_s4 }
  0x54   : > { %p423_p10 = pnand %p422_p4, %p687_p9 }
  0x55   : > { %p428_p5 = por %p427_p2, %p426_p1 }
  0x56   : > { %p424_p12 = pneg %p423_p10 }
  0x57   : > { %p430_p11 = por %p429_p8, %p428_p5 }
  0x59   : > { %p431_p0 = pnand %p430_p11, %p424_p12 }
  0x5b   : > { %434 = shalt.err (!%p431_p0)
}
  0x5c   : > { %315 = dma.vmem_to_hbm [thread:$0]  (%p687_p9), %s625_s29, 32, %s630_s4, %s196_s5  }
  0x5d PF: > { %s224_s26 = sand.u32 1, %s469_s6   ;;  %p688_p7 = scmp.ne.s32.totalorder %s683_s21, 0 }
  0x5e   : > { %p689_p13 = scmp.ge.s32.totalorder %s489_s11, 2  ;;  %s225_s28 = scalar_lea.sflag [#allocation4], %s224_s26 }
  0x60   : > { %p322_p3 = pnand %p689_p13, %p688_p7 }
  0x62   : > { %464 = dma.done.wait (!%p322_p3), %s225_s28, 32  }
  0x63   : > { %466 = vsyncadd (!%p322_p3), %s225_s28, 4294967264  ;;  %s17_s11 = sadd.s32 1, %s489_s11   ;;  %s690_s6 = smov %s473_s7 }
  0x64   : > { %p14_p6 = scmp.ge.s32.totalorder %s17_s11, 4   ;;  %s691_s7 = smov %s477_s8 }
  0x65   : > { %s692_s8 = smov %s560_s20  ;;  %s693_s9 = smov %s485_s10 }
  0x66   : > { %s694_s10 = smov %s696_s14  ;;  %16 = sbr.rel (!%p14_p6) target bundleno = 6 (0x6), region = 69 }
  0x6d   :  { %230 = vsyncpa [#allocation3], 1 }
  0x6e   :  { %232 = vsyncpa [#allocation3 + $0x1], 1 }
  0x6f   :  { %233 = vsyncpa [#allocation4], 1 }
  0x70   :  { %235 = vsyncpa [#allocation4 + $0x1], 1 }

</bundles_post_ra>
